<compile_context>
chip_gen: v5e
topology: v5e:2x2
jax: 0.10.0
libtpu: 0.0.40
codegen_flags: <defaults>
</compile_context>

<pallas_src>
import jax
import jax.numpy as jnp
from jax.experimental import pallas as pl
from jax.experimental.pallas import tpu as pltpu

# ---------------- configuration (small, forward-consistent shapes) ----------
B = 2                      # batch
D_MODEL = 128              # d_model (small stand-in for 512)
NUM_FEATURE_NUM = 4        # number_feature_num
CAT_VOCABS = (5, 7, 3)     # category_feature_num (vocab size per categorical)
N_CAT = len(CAT_VOCABS)
N_TOKENS = N_CAT + NUM_FEATURE_NUM
E_LAYERS = 0               # encoder not provided -> identity (see TODO above)
NUM_CLASSES = 16
HEAD_IN = (D_MODEL // (2 ** E_LAYERS)) * N_TOKENS      # 896

C_PAD = 128                                            # lane-dense output width
TILE_B = 8                                             # f32 sublane multiple
B_PAD = ((B + TILE_B - 1) // TILE_B) * TILE_B          # padded batch
CAT_FLAT = N_CAT * D_MODEL                             # 384
NUM_FLAT = NUM_FEATURE_NUM * D_MODEL                   # 512


# ---------------- Pallas kernel ---------------------------------------------
def tc_kernel(cat_ref, xnum_ref, nw_ref, nb_ref, hw_ref, hb_ref, out_ref):
    """
    cat_ref : (TILE_B, N_CAT*D)   gathered categorical embeddings, pre-flattened
    xnum_ref: (TILE_B, N_NUM)     raw numeric features
    nw_ref  : (1, N_NUM*D)        NumEmbedding weights, flattened (j*D + d)
    nb_ref  : (1, N_NUM*D)        NumEmbedding biases, flattened
    hw_ref  : (HEAD_IN, C_PAD)    head weight, pre-transposed + zero-padded
    hb_ref  : (1, C_PAD)          head bias, zero-padded
    out_ref : (TILE_B, C_PAD)     lane-dense output tile
    """
    xnum = xnum_ref[...]                                          # (TB, N_NUM)

    # Broadcast each numeric feature across D lanes -> lane-dense (TB, N_NUM*D),
    # then ONE fused multiply-add for the whole NumEmbedding slab.
    xb = jnp.concatenate(
        [jnp.broadcast_to(xnum[:, j:j + 1], (TILE_B, D_MODEL))
         for j in range(NUM_FEATURE_NUM)],
        axis=-1)                                                  # (TB, N_NUM*D)
    num_flat = xb * nw_ref[...] + nb_ref[...]                     # (TB, N_NUM*D)

    # Full flattened token slab (categorical tokens first), lane concat only.
    flat = jnp.concatenate([cat_ref[...], num_flat], axis=-1)     # (TB, HEAD_IN)

    # Single K=HEAD_IN contraction on the MXU, f32 accumulation, lane-dense store.
    out_ref[...] = (
        jnp.dot(flat, hw_ref[...], preferred_element_type=jnp.float32)
        + hb_ref[...]
    )


# ---------------- parameter preparation (done once, not per forward) --------
def prepare_params(params):
    p = dict(params)
    p["num_w_flat"] = params["num_w"].reshape(1, NUM_FLAT)
    p["num_b_flat"] = params["num_b"].reshape(1, NUM_FLAT)
    # PyTorch Linear: out = flat @ W.T + b  ->  store W.T contiguously, pad lanes.
    hw_t = params["head_w"].T                                      # (HEAD_IN, C)
    p["head_w_p"] = jnp.zeros((HEAD_IN, C_PAD), jnp.float32).at[:, :NUM_CLASSES].set(hw_t)
    p["head_b_p"] = jnp.zeros((1, C_PAD), jnp.float32).at[0, :NUM_CLASSES].set(params["head_b"])
    return p


# ---------------- wrapper ----------------------------------------------------
def tc_forward(x_number, x_category, params):
    # Glue: embedding-table gathers (data-dependent), then flatten to n*D + d order.
    cat = jnp.stack(
        [jnp.take(params[f"emb_{i}"], x_category[:, i], axis=0) for i in range(N_CAT)],
        axis=1,
    ).reshape(B, CAT_FLAT)                                         # (B, N_CAT*D)

    # Pad batch to a sublane multiple so every vreg / MXU row tile is full.
    pad = B_PAD - B
    cat_p = jnp.pad(cat, ((0, pad), (0, 0)))
    xnum_p = jnp.pad(x_number, ((0, pad), (0, 0)))

    out = pl.pallas_call(
        tc_kernel,
        out_shape=jax.ShapeDtypeStruct((B_PAD, C_PAD), jnp.float32),
        grid=(B_PAD // TILE_B,),
        in_specs=[
            pl.BlockSpec((TILE_B, CAT_FLAT), lambda i: (i, 0)),          # cat
            pl.BlockSpec((TILE_B, NUM_FEATURE_NUM), lambda i: (i, 0)),   # xnum
            pl.BlockSpec((1, NUM_FLAT), lambda i: (0, 0)),               # num_w
            pl.BlockSpec((1, NUM_FLAT), lambda i: (0, 0)),               # num_b
            pl.BlockSpec((HEAD_IN, C_PAD), lambda i: (0, 0)),            # head_w
            pl.BlockSpec((1, C_PAD), lambda i: (0, 0)),                  # head_b
        ],
        out_specs=pl.BlockSpec((TILE_B, C_PAD), lambda i: (i, 0)),
        compiler_params=pltpu.CompilerParams(
            dimension_semantics=("parallel",)),
    )(cat_p, xnum_p, params["num_w_flat"], params["num_b_flat"],
      params["head_w_p"], params["head_b_p"])

    return out[:B, :NUM_CLASSES]


# ---------------- pure-JAX reference (for correctness check) ----------------
def tc_reference(x_number, x_category, params):
    cat = jnp.stack(
        [jnp.take(params[f"emb_{i}"], x_category[:, i], axis=0) for i in range(N_CAT)],
        axis=1,
    )
    num = x_number[:, :, None] * params["num_w"][None] + params["num_b"][None]
    x = jnp.concatenate([cat, num], axis=1)          # (B, N_TOKENS, D)
    flat = x.reshape(B, -1)                          # (B, N_TOKENS*D)
    return flat @ params["head_w"].T + params["head_b"]


# ---------------- main -------------------------------------------------------
if __name__ == "__main__":
    key = jax.random.PRNGKey(0)
    keys = jax.random.split(key, 8 + N_CAT)

    params = {
        "num_w": jax.random.normal(keys[0], (NUM_FEATURE_NUM, D_MODEL), jnp.float32),
        "num_b": jax.random.normal(keys[1], (NUM_FEATURE_NUM, D_MODEL), jnp.float32),
        "head_w": jax.random.normal(keys[2], (NUM_CLASSES, HEAD_IN), jnp.float32) * 0.05,
        "head_b": jax.random.normal(keys[3], (NUM_CLASSES,), jnp.float32),
    }
    for i, vocab in enumerate(CAT_VOCABS):
        params[f"emb_{i}"] = jax.random.normal(keys[4 + i], (vocab, D_MODEL), jnp.float32)

    x_number = jax.random.normal(keys[-2], (B, NUM_FEATURE_NUM), jnp.float32)
    x_category = jnp.stack(
        [
            jax.random.randint(jax.random.fold_in(keys[-1], i), (B,), 0, CAT_VOCABS[i])
            for i in range(N_CAT)
        ],
        axis=1,
    ).astype(jnp.int32)

    # One-time parameter layout prep (pre-transposed / padded / flattened).
    params = prepare_params(params)

    out = tc_forward(x_number, x_category, params)
    out = jax.block_until_ready(out)

    ref = tc_reference(x_number, x_category, params)
    assert out.shape == (B, NUM_CLASSES)
    assert jnp.allclose(out, ref, atol=1e-3, rtol=1e-3), "mismatch vs reference"

    print("KERNEL_OK")
</pallas_src>

<mosaic_0001>
module attributes {stable_mosaic.version = 11 : i64} {
  func.func @tc_kernel(%arg0: i32, %arg1: memref<8x384xf32, #tpu.memory_space<vmem>>, %arg2: memref<8x4xf32, #tpu.memory_space<vmem>>, %arg3: memref<1x512xf32, #tpu.memory_space<vmem>>, %arg4: memref<1x512xf32, #tpu.memory_space<vmem>>, %arg5: memref<896x128xf32, #tpu.memory_space<vmem>>, %arg6: memref<1x128xf32, #tpu.memory_space<vmem>>, %arg7: memref<8x128xf32, #tpu.memory_space<vmem>>) attributes {dimension_semantics = [#tpu.dimension_semantics<parallel>], iteration_bounds = array<i64: 1>, scalar_prefetch = 0 : i64, scratch_operands = 0 : i64, tpu.core_type = #tpu.core_type<tc>, window_params = [{transform_indices = @transform_0, window_bounds = array<i64: 8, 384>}, {transform_indices = @transform_1, window_bounds = array<i64: 8, 4>}, {pipeline_mode = #tpu.pipeline_mode<synchronous>, transform_indices = @transform_2, window_bounds = array<i64: 1, 512>}, {pipeline_mode = #tpu.pipeline_mode<synchronous>, transform_indices = @transform_3, window_bounds = array<i64: 1, 512>}, {pipeline_mode = #tpu.pipeline_mode<synchronous>, transform_indices = @transform_4, window_bounds = array<i64: 896, 128>}, {pipeline_mode = #tpu.pipeline_mode<synchronous>, transform_indices = @transform_5, window_bounds = array<i64: 1, 128>}, {transform_indices = @transform_6, window_bounds = array<i64: 8, 128>}]} {
    %c0 = arith.constant 0 : index
    %c0_0 = arith.constant 0 : index
    %0 = vector.load %arg2[%c0, %c0_0] : memref<8x4xf32, #tpu.memory_space<vmem>>, vector<8x4xf32>
    %1 = vector.extract_strided_slice %0 {offsets = [0, 0], sizes = [8, 1], strides = [1, 1]} : vector<8x4xf32> to vector<8x1xf32>
    %2 = vector.shape_cast %1 : vector<8x1xf32> to vector<8x1xf32>
    %3 = vector.broadcast %2 : vector<8x1xf32> to vector<8x128xf32>
    %4 = vector.extract_strided_slice %0 {offsets = [0, 1], sizes = [8, 1], strides = [1, 1]} : vector<8x4xf32> to vector<8x1xf32>
    %5 = vector.shape_cast %4 : vector<8x1xf32> to vector<8x1xf32>
    %6 = vector.broadcast %5 : vector<8x1xf32> to vector<8x128xf32>
    %7 = vector.extract_strided_slice %0 {offsets = [0, 2], sizes = [8, 1], strides = [1, 1]} : vector<8x4xf32> to vector<8x1xf32>
    %8 = vector.shape_cast %7 : vector<8x1xf32> to vector<8x1xf32>
    %9 = vector.broadcast %8 : vector<8x1xf32> to vector<8x128xf32>
    %10 = vector.extract_strided_slice %0 {offsets = [0, 3], sizes = [8, 1], strides = [1, 1]} : vector<8x4xf32> to vector<8x1xf32>
    %11 = vector.shape_cast %10 : vector<8x1xf32> to vector<8x1xf32>
    %12 = vector.broadcast %11 : vector<8x1xf32> to vector<8x128xf32>
    %13 = tpu.concatenate %3, %6, %9, %12 in 1 : vector<8x128xf32>, vector<8x128xf32>, vector<8x128xf32>, vector<8x128xf32> -> vector<8x512xf32>
    %c0_1 = arith.constant 0 : index
    %c0_2 = arith.constant 0 : index
    %14 = vector.load %arg3[%c0_1, %c0_2] : memref<1x512xf32, #tpu.memory_space<vmem>>, vector<1x512xf32>
    %15 = vector.broadcast %14 : vector<1x512xf32> to vector<8x512xf32>
    %16 = arith.mulf %13, %15 : vector<8x512xf32>
    %c0_3 = arith.constant 0 : index
    %c0_4 = arith.constant 0 : index
    %17 = vector.load %arg4[%c0_3, %c0_4] : memref<1x512xf32, #tpu.memory_space<vmem>>, vector<1x512xf32>
    %18 = vector.broadcast %17 : vector<1x512xf32> to vector<8x512xf32>
    %19 = arith.addf %16, %18 : vector<8x512xf32>
    %c0_5 = arith.constant 0 : index
    %c0_6 = arith.constant 0 : index
    %20 = vector.load %arg1[%c0_5, %c0_6] : memref<8x384xf32, #tpu.memory_space<vmem>>, vector<8x384xf32>
    %21 = tpu.concatenate %20, %19 in 1 : vector<8x384xf32>, vector<8x512xf32> -> vector<8x896xf32>
    %c0_7 = arith.constant 0 : index
    %c0_8 = arith.constant 0 : index
    %22 = vector.load %arg5[%c0_7, %c0_8] : memref<896x128xf32, #tpu.memory_space<vmem>>, vector<896x128xf32>
    %cst = arith.constant dense<0.000000e+00> : vector<8x128xf32>
    %23 = tpu.matmul %21, %22, %cst {dimension_numbers = #tpu.dot_dimension_numbers<[1], [0], [0], [1], [0, 0, 1, 1], [], []>} : vector<8x896xf32>, vector<896x128xf32>, vector<8x128xf32> -> vector<8x128xf32>
    %c0_9 = arith.constant 0 : index
    %c0_10 = arith.constant 0 : index
    %24 = vector.load %arg6[%c0_9, %c0_10] : memref<1x128xf32, #tpu.memory_space<vmem>>, vector<1x128xf32>
    %25 = vector.broadcast %24 : vector<1x128xf32> to vector<8x128xf32>
    %26 = arith.addf %23, %25 : vector<8x128xf32>
    %c0_11 = arith.constant 0 : index
    %c0_12 = arith.constant 0 : index
    %27 = vector.load %arg7[%c0_11, %c0_12] : memref<8x128xf32, #tpu.memory_space<vmem>>, vector<8x128xf32>
    tpu.vector_store %arg7[%c0_11, %c0_12], %26 {strides = array<i32>} : memref<8x128xf32, #tpu.memory_space<vmem>>, vector<8x128xf32>,
    return
  }
  func.func @transform_0(%arg0: i32) -> (i32, i32) {
    %c0_i32 = arith.constant 0 : i32
    %c0_i32_0 = arith.constant 0 : i32
    return %arg0, %c0_i32 : i32, i32
  }
  func.func @transform_1(%arg0: i32) -> (i32, i32) {
    %c0_i32 = arith.constant 0 : i32
    %c0_i32_0 = arith.constant 0 : i32
    return %arg0, %c0_i32 : i32, i32
  }
  func.func @transform_2(%arg0: i32) -> (i32, i32) {
    %c0_i32 = arith.constant 0 : i32
    %c0_i32_0 = arith.constant 0 : i32
    %c0_i32_1 = arith.constant 0 : i32
    return %c0_i32, %c0_i32_0 : i32, i32
  }
  func.func @transform_3(%arg0: i32) -> (i32, i32) {
    %c0_i32 = arith.constant 0 : i32
    %c0_i32_0 = arith.constant 0 : i32
    %c0_i32_1 = arith.constant 0 : i32
    return %c0_i32, %c0_i32_0 : i32, i32
  }
  func.func @transform_4(%arg0: i32) -> (i32, i32) {
    %c0_i32 = arith.constant 0 : i32
    %c0_i32_0 = arith.constant 0 : i32
    %c0_i32_1 = arith.constant 0 : i32
    return %c0_i32, %c0_i32_0 : i32, i32
  }
  func.func @transform_5(%arg0: i32) -> (i32, i32) {
    %c0_i32 = arith.constant 0 : i32
    %c0_i32_0 = arith.constant 0 : i32
    %c0_i32_1 = arith.constant 0 : i32
    return %c0_i32, %c0_i32_0 : i32, i32
  }
  func.func @transform_6(%arg0: i32) -> (i32, i32) {
    %c0_i32 = arith.constant 0 : i32
    %c0_i32_0 = arith.constant 0 : i32
    return %arg0, %c0_i32 : i32, i32
  }
}

</mosaic_0001>

<bundles_post_ra>
// kernel: tpu_custom_call.1
= control target key start
LH: loop header
LB: loop body
LE: loop exit
PB: predicated region body
PF: predicated region fallthrough
CT: control target
= control target key end

     0   :  { %11 = vsyncpa [#allocation3], 0  ;;  %s535_s0 = inlined_call_operand.hbm [shape: f32[8,384], index: 0, kind: input, shape index: {}]   ;;  %s536_s1 = inlined_call_operand.vmem [shape: f32[8,4], index: 1, kind: input, shape index: {}]   ;;  %s537_s2 = inlined_call_operand.vmem [shape: f32[1,512], index: 2, kind: input, shape index: {}]   ;;  %s538_s3 = inlined_call_operand.vmem [shape: f32[1,512], index: 3, kind: input, shape index: {}]   ;;  %s539_s4 = inlined_call_operand.hbm [shape: f32[896,128], index: 4, kind: input, shape index: {}]   ;;  %s540_s5 = inlined_call_operand.vmem [shape: f32[1,128], index: 5, kind: input, shape index: {}]   ;;  %s541_s6 = inlined_call_operand.hbm [shape: f32[8,128], index: 6, kind: output, shape index: {}]  }
   0x1   :  { %12 = vsyncpa [#allocation6], 0 }
   0x2   :  { %13 = vsyncpa [#allocation4], 0  ;;  %s19_s23 = sshll.u32 %s535_s0, 4  ;;  %s470_s24 = smov [#allocation2]   ;;  %s20_s23 = int_to_ptr.hbm [resolvable:$true] %s19_s23 }
   0x3   :  { %s21_s25 = sshll.u32 %s470_s24, 4  ;;  %s35_s28 = sshll.u32 %s539_s4, 4  ;;  %s22_s25 = int_to_ptr.vmem [resolvable:$true] %s21_s25  ;;  %s36_s28 = int_to_ptr.hbm [resolvable:$true] %s35_s28 }
   0x4   :  { %24 = dma.hbm_to_vmem [thread:$0]  %s20_s23, 384, %s22_s25, [#allocation3]  }
   0x5   :  { %s471_s29 = smov [#allocation5]   ;;  %s472_s7 = smov 128  }
   0x6   :  { %s37_s30 = sshll.u32 %s471_s29, 4  ;;  %s473_s8 = smov 8   ;;  %s38_s30 = int_to_ptr.vmem [resolvable:$true] %s37_s30 }
   0x7   :  { %43 = dma.hbm_to_vmem [thread:$0]  %s36_s28, 14336, %s38_s30, [#allocation6], %s472_s7, %s472_s7, %s473_s8  }
   0x8   :  { %464 = dma.done.wait [#allocation3], 384  }
   0x9   :  { %465 = vsyncadd [#allocation3], 4294966912 }
   0xa   :  { %466 = dma.done.wait [#allocation6], 14336  }
   0xb   :  { %467 = vsyncadd [#allocation6], 4294952960  ;;  %v474_v0 = vmov 0   ;;  %v475_v1 = vmov 1   ;;  %v54_v2 = vld [vmem:[%s536_s1] sm:$0xff]  ;;  %v118_v3 = vld [vmem:[#allocation5 + $0x78] sm:$0xff] }
   0xc   :  { %387 = vset.pattern.permute.xlu0 %v474_v0  ;;  %389 = vset.pattern.permute.xlu1 %v475_v1  ;;  %v117_v4 = vld [vmem:[#allocation5 + $0x70] sm:$0xff]  ;;  %v150_v5 = vld [vmem:[#allocation5 + $0x178] sm:$0xff]  ;;  %v116_v8 = vld [vmem:[#allocation5 + $0x68] sm:$0xff]  ;;  %v476_v16 = vmov 3   ;;  %v477_v17 = vmov 2   ;;  %s478_s12 = smov [#allocation7]  }
   0xd   :  { %57 = vperm.xlu0 %387, %v54_v2   ;;  %61 = vperm.xlu1 %389, %v54_v2   ;;  %v134_v6 = vld [vmem:[#allocation5 + $0xf8] sm:$0xff]  ;;  %v149_v7 = vld [vmem:[#allocation5 + $0x170] sm:$0xff]  ;;  %v148_v10 = vld [vmem:[#allocation5 + $0x168] sm:$0xff]  ;;  %s365_s13 = sshll.u32 %s478_s12, 4  ;;  %s367_s16 = sshll.u32 %s541_s6, 4  ;;  %s366_s13 = int_to_ptr.vmem [resolvable:$true] %s365_s13  ;;  %s368_s16 = int_to_ptr.hbm [resolvable:$true] %s367_s16 }
   0xe   :  { %219 = vmatpush.msra.mxu0 %v118_v3  ;;  %259 = vmatpush.msra.mxu2 %v150_v5  ;;  %v133_v9 = vld [vmem:[#allocation5 + $0xf0] sm:$0xff]  ;;  %v132_v11 = vld [vmem:[#allocation5 + $0xe8] sm:$0xff]  ;;  %v115_v12 = vld [vmem:[#allocation5 + $0x60] sm:$0xff] }
   0xf   :  { %239 = vmatpush.msra.mxu1 %v134_v6  ;;  %v147_v13 = vld [vmem:[#allocation5 + $0x160] sm:$0xff]  ;;  %v114_v14 = vld [vmem:[#allocation5 + $0x58] sm:$0xff]  ;;  %v113_v19 = vld [vmem:[#allocation5 + $0x50] sm:$0xff] }
  0x10   :  { %220 = vmatpush.msra.mxu0 %v117_v4  ;;  %260 = vmatpush.msra.mxu2 %v149_v7  ;;  %v131_v15 = vld [vmem:[#allocation5 + $0xe0] sm:$0xff]  ;;  %v146_v18 = vld [vmem:[#allocation5 + $0x158] sm:$0xff]  ;;  %v145_v21 = vld [vmem:[#allocation5 + $0x150] sm:$0xff] }
  0x11   :  { %240 = vmatpush.msra.mxu1 %v133_v9  ;;  %v130_v20 = vld [vmem:[#allocation5 + $0xd8] sm:$0xff]  ;;  %v112_v22 = vld [vmem:[#allocation5 + $0x48] sm:$0xff]  ;;  %v129_v23 = vld [vmem:[#allocation5 + $0xd0] sm:$0xff] }
  0x12   :  { %221 = vmatpush.msra.mxu0 %v116_v8  ;;  %261 = vmatpush.msra.mxu2 %v148_v10  ;;  %v166_v24 = vld [vmem:[#allocation5 + $0x1f8] sm:$0xff]  ;;  %v144_v25 = vld [vmem:[#allocation5 + $0x148] sm:$0xff]  ;;  %v111_v26 = vld [vmem:[#allocation5 + $0x40] sm:$0xff] }
  0x13   :  { %241 = vmatpush.msra.mxu1 %v132_v11  ;;  %v128_v27 = vld [vmem:[#allocation5 + $0xc8] sm:$0xff]  ;;  %279 = vmatpush.msra.mxu3 %v166_v24  ;;  %v165_v28 = vld [vmem:[#allocation5 + $0x1f0] sm:$0xff]  ;;  %v143_v29 = vld [vmem:[#allocation5 + $0x140] sm:$0xff] }
  0x14   :  { %222 = vmatpush.msra.mxu0 %v115_v12  ;;  %262 = vmatpush.msra.mxu2 %v147_v13  ;;  %v164_v30 = vld [vmem:[#allocation5 + $0x1e8] sm:$0xff]  ;;  %v110_v31 = vld [vmem:[#allocation5 + $0x38] sm:$0xff]  ;;  %v127_v32 = vld [vmem:[#allocation5 + $0xc0] sm:$0xff] }
  0x15   :  { %388 = vset.pattern.permute.xlu0 %v476_v16  ;;  %390 = vset.pattern.permute.xlu1 %v477_v17  ;;  %v142_v33 = vld [vmem:[#allocation5 + $0x138] sm:$0xff]  ;;  %v163_v34 = vld [vmem:[#allocation5 + $0x1e0] sm:$0xff]  ;;  %v109_v35 = vld [vmem:[#allocation5 + $0x30] sm:$0xff] }
  0x16   :  { %69 = vperm.xlu0 %388, %v54_v2   ;;  %65 = vperm.xlu1 %390, %v54_v2   ;;  %v126_v36 = vld [vmem:[#allocation5 + $0xb8] sm:$0xff]  ;;  %v141_v37 = vld [vmem:[#allocation5 + $0x130] sm:$0xff]  ;;  %v108_v39 = vld [vmem:[#allocation5 + $0x28] sm:$0xff] }
  0x17   :  { %223 = vmatpush.msra.mxu0 %v114_v14  ;;  %242 = vmatpush.msra.mxu1 %v131_v15  ;;  %v162_v38 = vld [vmem:[#allocation5 + $0x1d8] sm:$0xff]  ;;  %v125_v40 = vld [vmem:[#allocation5 + $0xb0] sm:$0xff]  ;;  %v140_v41 = vld [vmem:[#allocation5 + $0x128] sm:$0xff] }
  0x18   :  { %263 = vmatpush.msra.mxu2 %v146_v18  ;;  %280 = vmatpush.msra.mxu3 %v165_v28  ;;  %v161_v42 = vld [vmem:[#allocation5 + $0x1d0] sm:$0xff]  ;;  %v107_v43 = vld [vmem:[#allocation5 + $0x20] sm:$0xff]  ;;  %v124_v44 = vld [vmem:[#allocation5 + $0xa8] sm:$0xff] }
  0x19   :  { %224 = vmatpush.msra.mxu0 %v113_v19  ;;  %243 = vmatpush.msra.mxu1 %v130_v20  ;;  %v139_v45 = vld [vmem:[#allocation5 + $0x120] sm:$0xff]  ;;  %v160_v46 = vld [vmem:[#allocation5 + $0x1c8] sm:$0xff]  ;;  %v106_v47 = vld [vmem:[#allocation5 + $0x18] sm:$0xff] }
  0x1a   :  { %264 = vmatpush.msra.mxu2 %v145_v21  ;;  %281 = vmatpush.msra.mxu3 %v164_v30  ;;  %v123_v48 = vld [vmem:[#allocation5 + $0xa0] sm:$0xff]  ;;  %v138_v49 = vld [vmem:[#allocation5 + $0x118] sm:$0xff]  ;;  %v105_v51 = vld [vmem:[#allocation5 + $0x10] sm:$0xff] }
  0x1b   :  { %225 = vmatpush.msra.mxu0 %v112_v22  ;;  %244 = vmatpush.msra.mxu1 %v129_v23  ;;  %v159_v50 = vld [vmem:[#allocation5 + $0x1c0] sm:$0xff]  ;;  %v122_v52 = vld [vmem:[#allocation5 + $0x98] sm:$0xff]  ;;  %v137_v53 = vld [vmem:[#allocation5 + $0x110] sm:$0xff] }
  0x1c   :  { %265 = vmatpush.msra.mxu2 %v144_v25  ;;  %282 = vmatpush.msra.mxu3 %v163_v34  ;;  %v158_v54 = vld [vmem:[#allocation5 + $0x1b8] sm:$0xff]  ;;  %v104_v55 = vld [vmem:[#allocation5 + $0x8] sm:$0xff]  ;;  %v121_v56 = vld [vmem:[#allocation5 + $0x90] sm:$0xff] }
  0x1d   :  { %226 = vmatpush.msra.mxu0 %v111_v26  ;;  %245 = vmatpush.msra.mxu1 %v128_v27  ;;  %v136_v57 = vld [vmem:[#allocation5 + $0x108] sm:$0xff]  ;;  %v157_v58 = vld [vmem:[#allocation5 + $0x1b0] sm:$0xff]  ;;  %v103_v59 = vld [vmem:[#allocation5] sm:$0xff] }
  0x1e   :  { %266 = vmatpush.msra.mxu2 %v143_v29  ;;  %283 = vmatpush.msra.mxu3 %v162_v38  ;;  %v120_v60 = vld [vmem:[#allocation5 + $0x88] sm:$0xff]  ;;  %v182_v61 = vld [vmem:[#allocation5 + $0x278] sm:$0xff]  ;;  %v135_v62 = vld [vmem:[#allocation5 + $0x100] sm:$0xff] }
  0x1f   :  { %227 = vmatpush.msra.mxu0 %v110_v31  ;;  %246 = vmatpush.msra.mxu1 %v127_v32  ;;  %v119_v63 = vld [vmem:[#allocation5 + $0x80] sm:$0xff]  ;;  %v214_v0 = vld [vmem:[#allocation5 + $0x378] sm:$0xff]  ;;  %v181_v1 = vld [vmem:[#allocation5 + $0x270] sm:$0xff] }
  0x20   :  { %267 = vmatpush.msra.mxu2 %v142_v33  ;;  %284 = vmatpush.msra.mxu3 %v161_v42  ;;  %v198_v2 = vld [vmem:[#allocation5 + $0x2f8] sm:$0xff]  ;;  %v213_v3 = vld [vmem:[#allocation5 + $0x370] sm:$0xff]  ;;  %v156_v4 = vld [vmem:[#allocation5 + $0x1a8] sm:$0xff] }
  0x21   :  { %228 = vmatpush.msra.mxu0 %v109_v35  ;;  %247 = vmatpush.msra.mxu1 %v126_v36  ;;  %v180_v5 = vld [vmem:[#allocation5 + $0x268] sm:$0xff]  ;;  %v197_v6 = vld [vmem:[#allocation5 + $0x2f0] sm:$0xff]  ;;  %v155_v8 = vld [vmem:[#allocation5 + $0x1a0] sm:$0xff] }
  0x22   :  { %268 = vmatpush.msra.mxu2 %v141_v37  ;;  %285 = vmatpush.msra.mxu3 %v160_v46  ;;  %v212_v7 = vld [vmem:[#allocation5 + $0x368] sm:$0xff]  ;;  %v179_v9 = vld [vmem:[#allocation5 + $0x260] sm:$0xff]  ;;  %v154_v12 = vld [vmem:[#allocation5 + $0x198] sm:$0xff] }
  0x23   :  { %229 = vmatpush.msra.mxu0 %v108_v39  ;;  %248 = vmatpush.msra.mxu1 %v125_v40  ;;  %v196_v10 = vld [vmem:[#allocation5 + $0x2e8] sm:$0xff]  ;;  %v211_v11 = vld [vmem:[#allocation5 + $0x360] sm:$0xff]  ;;  %v178_v13 = vld [vmem:[#allocation5 + $0x258] sm:$0xff] }
  0x24   :  { %269 = vmatpush.msra.mxu2 %v140_v41  ;;  %286 = vmatpush.msra.mxu3 %v159_v50  ;;  %v195_v14 = vld [vmem:[#allocation5 + $0x2e0] sm:$0xff]  ;;  %v210_v15 = vld [vmem:[#allocation5 + $0x358] sm:$0xff]  ;;  %v153_v16 = vld [vmem:[#allocation5 + $0x190] sm:$0xff] }
  0x25   :  { %230 = vmatpush.msra.mxu0 %v107_v43  ;;  %249 = vmatpush.msra.mxu1 %v124_v44  ;;  %v177_v17 = vld [vmem:[#allocation5 + $0x250] sm:$0xff]  ;;  %v194_v18 = vld [vmem:[#allocation5 + $0x2d8] sm:$0xff]  ;;  %v176_v20 = vld [vmem:[#allocation5 + $0x248] sm:$0xff] }
  0x26   :  { %270 = vmatpush.msra.mxu2 %v139_v45  ;;  %287 = vmatpush.msra.mxu3 %v158_v54  ;;  %v209_v19 = vld [vmem:[#allocation5 + $0x350] sm:$0xff]  ;;  %v208_v22 = vld [vmem:[#allocation5 + $0x348] sm:$0xff]  ;;  %v175_v23 = vld [vmem:[#allocation5 + $0x240] sm:$0xff] }
  0x27   :  { %231 = vmatpush.msra.mxu0 %v106_v47  ;;  %250 = vmatpush.msra.mxu1 %v123_v48  ;;  %v193_v21 = vld [vmem:[#allocation5 + $0x2d0] sm:$0xff]  ;;  %v192_v24 = vld [vmem:[#allocation5 + $0x2c8] sm:$0xff]  ;;  %v207_v25 = vld [vmem:[#allocation5 + $0x340] sm:$0xff] }
  0x28   :  { %271 = vmatpush.msra.mxu2 %v138_v49  ;;  %288 = vmatpush.msra.mxu3 %v157_v58  ;;  %v174_v26 = vld [vmem:[#allocation5 + $0x238] sm:$0xff]  ;;  %v191_v27 = vld [vmem:[#allocation5 + $0x2c0] sm:$0xff]  ;;  %v173_v29 = vld [vmem:[#allocation5 + $0x230] sm:$0xff] }
  0x29   :  { %232 = vmatpush.msra.mxu0 %v105_v51  ;;  %251 = vmatpush.msra.mxu1 %v122_v52  ;;  %v206_v28 = vld [vmem:[#allocation5 + $0x338] sm:$0xff]  ;;  %v172_v31 = vld [vmem:[#allocation5 + $0x228] sm:$0xff]  ;;  %v171_v32 = vld [vmem:[#allocation5 + $0x220] sm:$0xff] }
  0x2a   :  { %272 = vmatpush.msra.mxu2 %v137_v53  ;;  %289 = vmatpush.msra.mxu3 %v156_v4  ;;  %v190_v30 = vld [vmem:[#allocation5 + $0x2b8] sm:$0xff]  ;;  %v100_v33 = vld [vmem:[#allocation2] sm:$0xff]  ;;  %v205_v34 = vld [vmem:[#allocation5 + $0x330] sm:$0xff] }
  0x2b   :  { %233 = vmatpush.msra.mxu0 %v104_v55  ;;  %252 = vmatpush.msra.mxu1 %v121_v56  ;;  %v152_v35 = vld [vmem:[#allocation5 + $0x188] sm:$0xff]  ;;  %v170_v36 = vld [vmem:[#allocation5 + $0x218] sm:$0xff]  ;;  %v189_v37 = vld [vmem:[#allocation5 + $0x2b0] sm:$0xff] }
  0x2c   :  { %273 = vmatpush.msra.mxu2 %v136_v57  ;;  %290 = vmatpush.msra.mxu3 %v155_v8  ;;  %v102_v38 = vld [vmem:[#allocation2 + $0x10] sm:$0xff]  ;;  %v204_v39 = vld [vmem:[#allocation5 + $0x328] sm:$0xff]  ;;  %v151_v40 = vld [vmem:[#allocation5 + $0x180] sm:$0xff] }
  0x2d   :  { %234 = vmatpush.msra.mxu0 %v103_v59  ;;  %253 = vmatpush.msra.mxu1 %v120_v60  ;;  %v169_v41 = vld [vmem:[#allocation5 + $0x210] sm:$0xff]  ;;  %v188_v42 = vld [vmem:[#allocation5 + $0x2a8] sm:$0xff]  ;;  %v203_v43 = vld [vmem:[#allocation5 + $0x320] sm:$0xff] }
  0x2e   :  { %274 = vmatpush.msra.mxu2 %v135_v62  ;;  %291 = vmatpush.msra.mxu3 %v154_v12  ;;  %v168_v44 = vld [vmem:[#allocation5 + $0x208] sm:$0xff]  ;;  %v187_v45 = vld [vmem:[#allocation5 + $0x2a0] sm:$0xff]  ;;  %v101_v46 = vld [vmem:[#allocation2 + $0x8] sm:$0xff] }
  0x2f   :  { %299 = vmatpush.msrb.mxu0 %v182_v61  ;;  %254 = vmatpush.msra.mxu1 %v119_v63  ;;  %v202_v47 = vld [vmem:[#allocation5 + $0x318] sm:$0xff]  ;;  %v167_v48 = vld [vmem:[#allocation5 + $0x200] sm:$0xff]  ;;  %v201_v50 = vld [vmem:[#allocation5 + $0x310] sm:$0xff] }
  0x30   :  { %339 = vmatpush.msrb.mxu2 %v214_v0  ;;  %292 = vmatpush.msra.mxu3 %v153_v16  ;;  %v186_v49 = vld [vmem:[#allocation5 + $0x298] sm:$0xff]  ;;  %v185_v51 = vld [vmem:[#allocation5 + $0x290] sm:$0xff]  ;;  %v200_v52 = vld [vmem:[#allocation5 + $0x308] sm:$0xff] }
  0x31   :  { %300 = vmatpush.msrb.mxu0 %v181_v1  ;;  %319 = vmatpush.msrb.mxu1 %v198_v2  ;;  %v184_v53 = vld [vmem:[#allocation5 + $0x288] sm:$0xff]  ;;  %v199_v54 = vld [vmem:[#allocation5 + $0x300] sm:$0xff] }
  0x32   :  { %340 = vmatpush.msrb.mxu2 %v213_v3  ;;  %235 = vmatmul.f32.vlgmr.msra.gmra.mxu0 %v100_v33  ;;  %v183_v55 = vld [vmem:[#allocation5 + $0x280] sm:$0xff]  ;;  %v72_v56 = vld [vmem:[%s537_s2] sm:$0xf] }
  0x33   :  { %301 = vmatpush.msrb.mxu0 %v180_v5  ;;  %320 = vmatpush.msrb.mxu1 %v197_v6  ;;  %v86_v57 = vld [vmem:[%s538_s3] sm:$0xf]  ;;  %v74_v58 = vperm.slane %v72_v56, 0  ;;  %v75_v59 = vperm.slane %v72_v56, 1  ;;  %v77_v4 = vperm.slane %v72_v56, 3  ;;  %v76_v5 = vperm.slane %v72_v56, 2 }
  0x34   :  { %341 = vmatpush.msrb.mxu2 %v212_v7  ;;  %293 = vmatpush.msra.mxu3 %v152_v35  ;;  %v89_v60 = vperm.slane %v86_v57, 1  ;;  %v88_v61 = vperm.slane %v86_v57, 0  ;;  %v91_v6 = vperm.slane %v86_v57, 3  ;;  %v90_v7 = vperm.slane %v86_v57, 2 }
  0x35   :  { %302 = vmatpush.msrb.mxu0 %v179_v9  ;;  %321 = vmatpush.msrb.mxu1 %v196_v10 }
  0x36   :  { %342 = vmatpush.msrb.mxu2 %v211_v11  ;;  %294 = vmatpush.msra.mxu3 %v151_v40 }
  0x37   :  { %303 = vmatpush.msrb.mxu0 %v178_v13  ;;  %322 = vmatpush.msrb.mxu1 %v195_v14  ;;  %v391_v14 = vld [vmem:[%s540_s5] ss:$0 sm:$0xff] }
  0x38   :  { %343 = vmatpush.msrb.mxu2 %v210_v15  ;;  %255 = vmatmul.f32.vlgmr.msra.gmra.mxu1 %v101_v46 }
  0x39   :  { %304 = vmatpush.msrb.mxu0 %v177_v17  ;;  %323 = vmatpush.msrb.mxu1 %v194_v18 }
  0x3a   :  { %344 = vmatpush.msrb.mxu2 %v209_v19 }
  0x3b   :  { %305 = vmatpush.msrb.mxu0 %v176_v20  ;;  %324 = vmatpush.msrb.mxu1 %v193_v21 }
  0x3c   :  { %345 = vmatpush.msrb.mxu2 %v208_v22 }
  0x3d   :  { %306 = vmatpush.msrb.mxu0 %v175_v23  ;;  %325 = vmatpush.msrb.mxu1 %v192_v24 }
  0x3e   :  { %346 = vmatpush.msrb.mxu2 %v207_v25 }
  0x3f   :  { %307 = vmatpush.msrb.mxu0 %v174_v26  ;;  %326 = vmatpush.msrb.mxu1 %v191_v27 }
  0x40   :  { %347 = vmatpush.msrb.mxu2 %v206_v28 }
  0x41   :  { %308 = vmatpush.msrb.mxu0 %v173_v29  ;;  %327 = vmatpush.msrb.mxu1 %v190_v30 }
  0x42   :  { %348 = vmatpush.msrb.mxu2 %v205_v34 }
  0x43   :  { %309 = vmatpush.msrb.mxu0 %v172_v31  ;;  %328 = vmatpush.msrb.mxu1 %v189_v37 }
  0x44   :  { %275 = vmatmul.f32.vlgmr.msra.gmra.mxu2 %v102_v38 }
  0x45   :  { %310 = vmatpush.msrb.mxu0 %v171_v32  ;;  %349 = vmatpush.msrb.mxu2 %v204_v39 }
  0x46   :  { %329 = vmatpush.msrb.mxu1 %v188_v42 }
  0x47   :  { %311 = vmatpush.msrb.mxu0 %v170_v36  ;;  %350 = vmatpush.msrb.mxu2 %v203_v43 }
  0x48   :  { %330 = vmatpush.msrb.mxu1 %v187_v45 }
  0x49   :  { %312 = vmatpush.msrb.mxu0 %v169_v41  ;;  %351 = vmatpush.msrb.mxu2 %v202_v47 }
  0x4a   :  { %331 = vmatpush.msrb.mxu1 %v186_v49 }
  0x4b   :  { %313 = vmatpush.msrb.mxu0 %v168_v44  ;;  %352 = vmatpush.msrb.mxu2 %v201_v50 }
  0x4c   :  { %332 = vmatpush.msrb.mxu1 %v185_v51 }
  0x4d   :  { %314 = vmatpush.msrb.mxu0 %v167_v48  ;;  %353 = vmatpush.msrb.mxu2 %v200_v52 }
  0x4e   :  { %333 = vmatpush.msrb.mxu1 %v184_v53 }
  0x4f   :  { %354 = vmatpush.msrb.mxu2 %v199_v54 }
  0x50   :  { %334 = vmatpush.msrb.mxu1 %v183_v55 }
  0x7f   :  { %v58_v62 = vpop.permute.xlu0 %57  ;;  %v62_v63 = vpop.permute.xlu1 %61 }
  0x80   :  { %v82_v0 = vmul.f32 %v74_v58, %v58_v62  ;;  %v83_v1 = vmul.f32 %v75_v59, %v62_v63 }
  0x82   :  { %v97_v2 = vadd.f32 %v89_v60, %v83_v1  ;;  %v96_v3 = vadd.f32 %v88_v61, %v82_v0 }
  0x84   :  { %295 = vmatmul.f32.vlgmr.msra.gmra.mxu3 %v96_v3  ;;  %315 = vmatmul.f32.vlgmr.msrb.gmra.mxu0 %v97_v2 }
  0x88   :  { %v70_v8 = vpop.permute.xlu0 %69  ;;  %v66_v9 = vpop.permute.xlu1 %65 }
  0x89   :  { %v85_v10 = vmul.f32 %v77_v4, %v70_v8  ;;  %v84_v11 = vmul.f32 %v76_v5, %v66_v9 }
  0x8b   :  { %v99_v12 = vadd.f32 %v91_v6, %v85_v10  ;;  %v98_v13 = vadd.f32 %v90_v7, %v84_v11 }
  0x8d   :  { %355 = vmatmul.f32.vlgmr.msrb.gmra.mxu2 %v99_v12  ;;  %335 = vmatmul.f32.vlgmr.msrb.gmra.mxu1 %v98_v13 }
  0xaf   :  { %v236_v15 = vpop.f32.mrf.mxu0 }
  0xb0   :  { %v237_v16 = vadd.f32 %v391_v14, %v236_v15 }
  0xb5   :  { %v256_v17 = vpop.f32.mrf.mxu1 }
  0xb6   :  { %v257_v18 = vadd.f32 %v256_v17, %v237_v16 }
  0xc7   :  { %v276_v19 = vpop.f32.mrf.mxu2 }
  0xc8   :  { %v277_v20 = vadd.f32 %v276_v19, %v257_v18 }
 0x101   :  { %v316_v23 = vpop.f32.mrf.mxu0 }
 0x107   :  { %v296_v21 = vpop.f32.mrf.mxu3 }
 0x108   :  { %v297_v22 = vadd.f32 %v296_v21, %v277_v20 }
 0x10a   :  { %v317_v24 = vadd.f32 %v316_v23, %v297_v22  ;;  %v336_v25 = vpop.f32.mrf.mxu1 }
 0x10c   :  { %v337_v26 = vadd.f32 %v336_v25, %v317_v24 }
 0x110   :  { %v356_v27 = vpop.f32.mrf.mxu2 }
 0x111   :  { %v357_v28 = vadd.f32 %v356_v27, %v337_v26 }
 0x113   :  { %359 = vst [vmem:[#allocation7] sm:$0xff] %v357_v28 }
 0x114   :  { %370 = dma.vmem_to_hbm [thread:$0]  %s366_s13, 128, %s368_s16, [#allocation4]  }
 0x115   :  { %468 = dma.done.wait [#allocation4], 128  }
 0x116   :  { %469 = vsyncadd [#allocation4], 4294967168 }
 0x117   :  { %375 = vsyncpa [#allocation3], 1 }
 0x118   :  { %376 = vsyncpa [#allocation6], 1 }
 0x119   :  { %377 = vsyncpa [#allocation4], 1 }

</bundles_post_ra>
